<compile_context>
chip_gen: v7x
topology: tpu7x:2x2x1
jax: 0.10.0
libtpu: 0.0.40
codegen_flags: <defaults>
</compile_context>

<pallas_src>
import functools
import math

import jax
import jax.numpy as jnp
from jax import lax
from jax.experimental import pallas as pl
from jax.experimental.pallas import tpu as pltpu


def _round_up(a, b):
    return ((a + b - 1) // b) * b


def _gemm_bias_kernel(p_ref, w_ref, b_ref, o_ref):
    # p_ref: (TM, r*K)     bf16 packed im2col rows (r tokens per row)
    # w_ref: (r*K, r*Cout) bf16 block-diagonal weight (resident across steps)
    # b_ref: (1, r*Cout)   f32 bias tiled r times (resident)
    # o_ref: (TM, r*Cout)  output rows (lane-dense: r*Cout % 128 == 0 normally)
    acc = jnp.dot(p_ref[...], w_ref[...], preferred_element_type=jnp.float32)
    o_ref[...] = (acc + b_ref[...]).astype(o_ref.dtype)


@functools.partial(jax.jit, static_argnums=(3, 4),
                   static_argnames=("out_dtype", "tm_max"))
def patch_embed_forward(x, weight, bias, stride, padding, mask=None,
                        out_dtype=None, tm_max=2048):
    """PatchEmbed.forward.

    x:      (B, Cin, H, W)        float32, NCHW (PyTorch layout)
    weight: (Cout, Cin, Kh, Kw)   conv weight (PyTorch layout)
    bias:   (Cout,)
    mask:   optional (B, 1, mh, mw) 0/1 mask (Hiera's mask-unit mask)
    returns (B, Ho*Wo, Cout) in `out_dtype` (default: x.dtype)
    """
    B, Cin, H, W = x.shape
    Cout, _, Kh, Kw = weight.shape
    sh, sw = stride
    ph, pw = padding
    if out_dtype is None:
        out_dtype = x.dtype

    Ho = (H + 2 * ph - Kh) // sh + 1
    Wo = (W + 2 * pw - Kw) // sw + 1
    L = Ho * Wo
    K = Cin * Kh * Kw
    M = B * L

    # ---- NHWC + bf16 cast + mask multiply (single fused pass over x) -------
    xh = jnp.transpose(x, (0, 2, 3, 1)).astype(jnp.bfloat16)      # (B, H, W, Cin)
    if mask is not None:
        _, _, mh, mw = mask.shape
        m = mask
        if (mh, mw) != (H, W):
            # TODO(synk): only integer-scale nearest upsample implemented
            # (matches F.interpolate(mode='nearest') for integer scale factors).
            m = jnp.repeat(jnp.repeat(m, H // mh, axis=2), W // mw, axis=3)
        # matches Hiera's `x * mask.bool()` (0/1 regardless of mask values);
        # 0/1 multiply is exact in bf16.
        m = jnp.transpose((m != 0).astype(jnp.bfloat16), (0, 2, 3, 1))
        xh = xh * m

    # ---- Single fused im2col op (bf16, NHWC) --------------------------------
    # Output: (B, Ho, Wo, K) with feature ordering (Cin, Kh, Kw) -- channel
    # major; a one-hot kernel gather, so values are exact bf16 copies of xh.
    patches = lax.conv_general_dilated_patches(
        xh, filter_shape=(Kh, Kw), window_strides=(sh, sw),
        padding=[(ph, ph), (pw, pw)],
        dimension_numbers=("NHWC", "HWIO", "NHWC"))

    # ---- Lane-dense packing: r tokens per GEMM row ---------------------------
    # r*Cout is the smallest multiple of 128 => unmasked, lane-dense output
    # stores and a 4x smaller lane-padded output VMEM buffer (vs Cout=32).
    r = 128 // math.gcd(Cout, 128)
    if r > 8 or M % r != 0:
        r = 1                       # fallback: correct, but masked stores
    Mp, Kp, Np = M // r, r * K, r * Cout

    # Free, row-major reinterpretation: no data movement in HBM (K stays
    # un-padded in HBM; lane padding to 128-multiples happens only in VMEM).
    patches2d = patches.reshape(Mp, Kp)

    # Small weight: reorder to the (Cin, Kh, Kw) feature order, then expand to
    # a block-diagonal (kron with I_r) matrix matching the packed-row layout.
    w_mat = jnp.transpose(weight, (1, 2, 3, 0)).reshape(K, Cout).astype(jnp.bfloat16)
    w_big = jnp.kron(jnp.eye(r, dtype=jnp.bfloat16), w_mat)      # (Kp, Np)
    b_row = jnp.tile(bias.astype(jnp.float32), r).reshape(1, Np)

    # ---- Row tile selection --------------------------------------------------
    # Large tiles so per-step DMA >> fixed ~0.35us grid-step overhead, but keep
    # >= 4 grid steps when possible so both v7x TensorCores get work.
    TM = min(int(tm_max), _round_up(Mp, 8))
    if pl.cdiv(Mp, TM) < 4:
        TM = max(8, _round_up(pl.cdiv(Mp, 4), 8))
    grid = (pl.cdiv(Mp, TM),)
    # NOTE: if Mp % TM != 0 the last grid step reads rows past Mp (undefined
    # data, never written back -- Pallas masks the OOB portion of the store).

    # ---- VMEM budget (lane/sublane padded, double buffered) ------------------
    out_itemsize = jnp.dtype(out_dtype).itemsize
    lane = lambda n: _round_up(n, 128)
    sub = lambda n: _round_up(n, 8)
    vmem_bytes = (2 * sub(TM) * lane(Kp) * 2            # patches (bf16)
                  + 2 * sub(TM) * lane(Np) * out_itemsize   # output
                  + 2 * sub(Kp) * lane(Np) * 2          # resident weight
                  + 2 * 8 * lane(Np) * 4)               # resident bias
    vmem_limit = int(min(64 * 1024 * 1024, max(16 * 1024 * 1024, 2 * vmem_bytes)))

    cost = pl.CostEstimate(
        flops=2 * M * K * Cout,
        transcendentals=0,
        bytes_accessed=(Mp * Kp * 2 + Kp * Np * 2 + Np * 4
                        + Mp * Np * out_itemsize))

    # ---- Pallas row-tiled GEMM + bias (MXU, f32 accumulate) ------------------
    out2d = pl.pallas_call(
        _gemm_bias_kernel,
        out_shape=jax.ShapeDtypeStruct((Mp, Np), out_dtype),
        grid_spec=pltpu.PrefetchScalarGridSpec(
            num_scalar_prefetch=0,
            grid=grid,
            in_specs=[
                pl.BlockSpec((TM, Kp), lambda i: (i, 0)),
                pl.BlockSpec((Kp, Np), lambda i: (0, 0)),   # resident weight
                pl.BlockSpec((1, Np), lambda i: (0, 0)),    # resident bias
            ],
            out_specs=pl.BlockSpec((TM, Np), lambda i: (i, 0)),
        ),
        compiler_params=pltpu.CompilerParams(
            dimension_semantics=("parallel",),
            vmem_limit_bytes=vmem_limit),
        cost_estimate=cost,
    )(patches2d, w_big, b_row)

    # Free reshape back to tokens: (Mp, r*Cout) row-major == (M, Cout).
    return out2d.reshape(B, L, Cout)


def _reference_forward(x, weight, bias, stride, padding, mask=None):
    """Pure-JAX f32 reference (lax conv) for validation."""
    if mask is not None:
        _, _, mh, mw = mask.shape
        H, W = x.shape[2], x.shape[3]
        if (mh, mw) != (H, W):
            mask = jnp.repeat(jnp.repeat(mask, H // mh, axis=2), W // mw, axis=3)
        x = x * (mask != 0).astype(x.dtype)
    y = lax.conv_general_dilated(
        x, weight, window_strides=stride,
        padding=[(padding[0], padding[0]), (padding[1], padding[1])],
        dimension_numbers=("NCHW", "OIHW", "NCHW"),
    ) + bias.reshape(1, -1, 1, 1)
    B, C = y.shape[0], y.shape[1]
    return y.reshape(B, C, -1).transpose(0, 2, 1)


if __name__ == "__main__":
    # Small, Hiera-like configuration: dim_in=3, dim_out=32,
    # kernel=(7,7), stride=(4,4), padding=(3,3), input 16x16 -> 4x4=16 tokens.
    B, Cin, H, W = 2, 3, 16, 16
    Cout, Kh, Kw = 32, 7, 7
    stride, padding = (4, 4), (3, 3)

    key = jax.random.PRNGKey(0)
    kx, kw, kb, km = jax.random.split(key, 4)
    x = jax.random.normal(kx, (B, Cin, H, W), dtype=jnp.float32)
    weight = jax.random.normal(kw, (Cout, Cin, Kh, Kw), dtype=jnp.float32) * 0.02
    bias = jax.random.normal(kb, (Cout,), dtype=jnp.float32) * 0.01
    # Hiera-style mask-unit mask at 4x4 resolution (nearest-upsampled to 16x16).
    mask = (jax.random.uniform(km, (B, 1, 4, 4)) > 0.5).astype(jnp.float32)

    # bf16 streamed operands with f32 accumulation -> loosened tolerance vs
    # the pure-f32 reference (documented precision mode).
    RTOL, ATOL = 2e-2, 2e-2

    # unmasked path
    out = patch_embed_forward(x, weight, bias, stride, padding, mask=None)
    jax.block_until_ready(out)
    ref = _reference_forward(x, weight, bias, stride, padding, mask=None)
    assert out.shape == (B, 16, Cout), out.shape
    assert jnp.allclose(out, ref, rtol=RTOL, atol=ATOL)

    # masked path
    out_m = patch_embed_forward(x, weight, bias, stride, padding, mask=mask)
    jax.block_until_ready(out_m)
    ref_m = _reference_forward(x, weight, bias, stride, padding, mask=mask)
    assert jnp.allclose(out_m, ref_m, rtol=RTOL, atol=ATOL)

    # optional bf16-output path (halves the output HBM write stream)
    out_bf16 = patch_embed_forward(x, weight, bias, stride, padding, mask=mask,
                                   out_dtype=jnp.bfloat16)
    jax.block_until_ready(out_bf16)
    assert out_bf16.dtype == jnp.bfloat16
    assert jnp.allclose(out_bf16.astype(jnp.float32), ref_m, rtol=5e-2, atol=5e-2)

    print("KERNEL_OK")
</pallas_src>

<mosaic_0001>
module attributes {stable_mosaic.version = 11 : i64} {
  func.func @_gemm_bias_kernel(%arg0: i32, %arg1: memref<8x588xbf16, #tpu.memory_space<vmem>>, %arg2: memref<588x128xbf16, #tpu.memory_space<vmem>>, %arg3: memref<1x128xf32, #tpu.memory_space<vmem>>, %arg4: memref<8x128xf32, #tpu.memory_space<vmem>>) attributes {dimension_semantics = [#tpu.dimension_semantics<parallel>], iteration_bounds = array<i64: 1>, scalar_prefetch = 0 : i64, scratch_operands = 0 : i64, tpu.core_type = #tpu.core_type<tc>, window_params = [{transform_indices = @transform_0, window_bounds = array<i64: 8, 588>}, {pipeline_mode = #tpu.pipeline_mode<synchronous>, transform_indices = @transform_1, window_bounds = array<i64: 588, 128>}, {pipeline_mode = #tpu.pipeline_mode<synchronous>, transform_indices = @transform_2, window_bounds = array<i64: 1, 128>}, {transform_indices = @transform_3, window_bounds = array<i64: 8, 128>}]} {
    %c0 = arith.constant 0 : index
    %c0_0 = arith.constant 0 : index
    %0 = vector.load %arg1[%c0, %c0_0] : memref<8x588xbf16, #tpu.memory_space<vmem>>, vector<8x588xbf16>
    %c0_1 = arith.constant 0 : index
    %c0_2 = arith.constant 0 : index
    %1 = vector.load %arg2[%c0_1, %c0_2] : memref<588x128xbf16, #tpu.memory_space<vmem>>, vector<588x128xbf16>
    %cst = arith.constant dense<0.000000e+00> : vector<8x128xf32>
    %2 = tpu.matmul %0, %1, %cst {dimension_numbers = #tpu.dot_dimension_numbers<[1], [0], [0], [1], [0, 0, 1, 1], [], []>} : vector<8x588xbf16>, vector<588x128xbf16>, vector<8x128xf32> -> vector<8x128xf32>
    %c0_3 = arith.constant 0 : index
    %c0_4 = arith.constant 0 : index
    %3 = vector.load %arg3[%c0_3, %c0_4] : memref<1x128xf32, #tpu.memory_space<vmem>>, vector<1x128xf32>
    %4 = vector.broadcast %3 : vector<1x128xf32> to vector<8x128xf32>
    %5 = arith.addf %2, %4 : vector<8x128xf32>
    %c0_5 = arith.constant 0 : index
    %c0_6 = arith.constant 0 : index
    %6 = vector.load %arg4[%c0_5, %c0_6] : memref<8x128xf32, #tpu.memory_space<vmem>>, vector<8x128xf32>
    tpu.vector_store %arg4[%c0_5, %c0_6], %5 {strides = array<i32>} : memref<8x128xf32, #tpu.memory_space<vmem>>, vector<8x128xf32>,
    return
  }
  func.func @transform_0(%arg0: i32) -> (i32, i32) {
    %c0_i32 = arith.constant 0 : i32
    %c0_i32_0 = arith.constant 0 : i32
    return %arg0, %c0_i32 : i32, i32
  }
  func.func @transform_1(%arg0: i32) -> (i32, i32) {
    %c0_i32 = arith.constant 0 : i32
    %c0_i32_0 = arith.constant 0 : i32
    %c0_i32_1 = arith.constant 0 : i32
    return %c0_i32, %c0_i32_0 : i32, i32
  }
  func.func @transform_2(%arg0: i32) -> (i32, i32) {
    %c0_i32 = arith.constant 0 : i32
    %c0_i32_0 = arith.constant 0 : i32
    %c0_i32_1 = arith.constant 0 : i32
    return %c0_i32, %c0_i32_0 : i32, i32
  }
  func.func @transform_3(%arg0: i32) -> (i32, i32) {
    %c0_i32 = arith.constant 0 : i32
    %c0_i32_0 = arith.constant 0 : i32
    return %arg0, %c0_i32 : i32, i32
  }
}

</mosaic_0001>

<bundles_post_ra>
// kernel: tile.8
= control target key start
LH: loop header
LB: loop body
LE: loop exit
PB: predicated region body
PF: predicated region fallthrough
CT: control target
= control target key end

     0   :  { %s22_s0 = inlined_call_operand.vmem [shape: f32[32], index: 0, kind: input, shape index: {}]   ;;  %s23_s1 = inlined_call_operand.vmem [shape: f32[4,32], index: 1, kind: output, shape index: {}]  }
   0x1   :  { %v4_v0 = vld [vmem:[%s22_s0] ss:$0 sm:$0xff] }
   0x2   :  { %5 = vst [vmem:[%s23_s1] sm:$0xf] %v4_v0 }

// kernel: tile.9
= control target key start
LH: loop header
LB: loop body
LE: loop exit
PB: predicated region body
PF: predicated region fallthrough
CT: control target
= control target key end

     0   :  { %vm7_vm0 = vcmask 261120   ;;  %s37_s8 = smov 32   ;;  %s38_s9 = smov 64   ;;  %vm13_vm1 = vcmask 1048320   ;;  %vm19_vm2 = vcmask 785920   ;;  %vm25_vm3 = vcmask 523520   ;;  %s55_s0 = inlined_call_operand.vmem [shape: f32[4,32], index: 0, kind: input, shape index: {}]   ;;  %s56_s1 = inlined_call_operand.vmem [shape: f32[1,128], index: 1, kind: output, shape index: {}]  }
   0x1   :  { %v4_v0 = vld [vmem:[%s55_s0] sm:$0xf]  ;;  %s36_s0 = smov 96  }
   0x2   :  { %5 = vst [vmem:[#allocation1] sm:$0xf] %v4_v0 }
   0x9   :  { %v10_v1 = vld [vmem:[#allocation1 + $0x3] sm:$0x1]   ;;  %v22_v2 = vld [vmem:[#allocation1 + $0x1] sm:$0x1]   ;;  %v6_v3 = vld [vmem:[#allocation1] sm:$0x1]  }
   0xa   :  { %11 = vrot.lane.b32.xlu0 %v10_v1, %s36_s0  ;;  %23 = vrot.lane.b32.xlu1 %v22_v2, %s37_s8  ;;  %v16_v4 = vld [vmem:[#allocation1 + $0x2] sm:$0x1]   ;;  %8 = vst.msk [vmem:[#allocation0] sm:$0x1] %vm7_vm0, %v6_v3  }
   0xe   :  { %17 = vrot.lane.b32.xlu0 %v16_v4, %s38_s9 }
  0x7c   :  { %v12_v5 = vpop.permute.xlu0 %11   ;;  %v24_v6 = vpop.permute.xlu1 %23  }
  0x7d   :  { %14 = vst.msk [vmem:[#allocation0] sm:$0x1] %vm13_vm1, %v12_v5  }
  0x80   :  { %v18_v7 = vpop.permute.xlu0 %17  }
  0x81   :  { %20 = vst.msk [vmem:[#allocation0] sm:$0x1] %vm19_vm2, %v18_v7  }
  0x82   :  { %26 = vst.msk [vmem:[#allocation0] sm:$0x1] %vm25_vm3, %v24_v6  }
  0x89   :  { %v30_v8 = vld [vmem:[#allocation0] sm:$0x1] }
  0x8a   :  { %32 = vst [vmem:[%s56_s1] sm:$0x1] %v30_v8 }

// kernel: patch_embed_forward.1
= control target key start
LH: loop header
LB: loop body
LE: loop exit
PB: predicated region body
PF: predicated region fallthrough
CT: control target
= control target key end

     0   :  { %v622_v35 = vmov 0.0   ;;  %vm623_vm0 = vmmov 0   ;;  %vm341_vm1 = vcmask 1045504   ;;  %vm337_vm2 = vcmask 621568   ;;  %s770_s1 = inlined_call_operand.vmem [shape: bf16[588,128], index: 1, kind: input, shape index: {}]   ;;  %s771_s0 = inlined_call_operand.vmem [shape: bf16[8,588], index: 0, kind: input, shape index: {}]   ;;  %s772_s2 = inlined_call_operand.vmem [shape: f32[1,128], index: 2, kind: input, shape index: {}]   ;;  %s773_s3 = inlined_call_operand.vmem [shape: f32[8,128], index: 3, kind: output, shape index: {}]  }
   0x1   :  { %v580_v0 = vld [vmem:[%s770_s1 + $0x40] sm:$0xff]   ;;  %v584_v4 = vld [vmem:[%s770_s1 + $0x48] sm:$0xff]   ;;  %v588_v8 = vld [vmem:[%s770_s1 + $0x50] sm:$0xff]  }
   0x2   :  { %v581_v1 = vld [vmem:[%s770_s1] sm:$0xff]   ;;  %514 = vmatprep.subr.bf16.mxu0 %v580_v0  ;;  %v585_v5 = vld [vmem:[%s770_s1 + $0x8] sm:$0xff]   ;;  %v589_v9 = vld [vmem:[%s770_s1 + $0x10] sm:$0xff]  }
   0x3   :  { %v582_v2 = vld [vmem:[%s770_s1 + $0xc0] sm:$0xff]   ;;  %515 = vmatpush3.bf16.msra.mxu0 %v581_v1  ;;  %v586_v6 = vld [vmem:[%s770_s1 + $0xc8] sm:$0xff]   ;;  %v590_v10 = vld [vmem:[%s770_s1 + $0xd0] sm:$0xff]  }
   0x4   :  { %v583_v3 = vld [vmem:[%s770_s1 + $0x80] sm:$0xff]   ;;  %536 = vmatprep.subr.bf16.mxu1 %v582_v2  ;;  %516 = vmatprep.subr.bf16.mxu0 %v584_v4  ;;  %v587_v7 = vld [vmem:[%s770_s1 + $0x88] sm:$0xff]   ;;  %v591_v11 = vld [vmem:[%s770_s1 + $0x90] sm:$0xff]  }
   0x5   :  { %537 = vmatpush3.bf16.msra.mxu1 %v583_v3  ;;  %v592_v12 = vld [vmem:[%s770_s1 + $0x58] sm:$0xff]   ;;  %v596_v16 = vld [vmem:[%s770_s1 + $0x60] sm:$0xff]   ;;  %v600_v20 = vld [vmem:[%s770_s1 + $0x68] sm:$0xff]  }
   0x6   :  { %538 = vmatprep.subr.bf16.mxu1 %v586_v6  ;;  %v593_v13 = vld [vmem:[%s770_s1 + $0x18] sm:$0xff]   ;;  %v597_v17 = vld [vmem:[%s770_s1 + $0x20] sm:$0xff]   ;;  %v601_v21 = vld [vmem:[%s770_s1 + $0x28] sm:$0xff]  }
   0x7   :  { %517 = vmatpush3.bf16.msra.mxu0 %v585_v5  ;;  %v594_v14 = vld [vmem:[%s770_s1 + $0xd8] sm:$0xff]   ;;  %v598_v18 = vld [vmem:[%s770_s1 + $0xe0] sm:$0xff]   ;;  %v602_v22 = vld [vmem:[%s770_s1 + $0xe8] sm:$0xff]  }
   0x8   :  { %518 = vmatprep.subr.bf16.mxu0 %v588_v8  ;;  %v595_v15 = vld [vmem:[%s770_s1 + $0x98] sm:$0xff]   ;;  %v599_v19 = vld [vmem:[%s770_s1 + $0xa0] sm:$0xff]   ;;  %v603_v23 = vld [vmem:[%s770_s1 + $0xa8] sm:$0xff]  }
   0x9   :  { %539 = vmatpush3.bf16.msra.mxu1 %v587_v7  ;;  %v604_v24 = vld [vmem:[%s770_s1 + $0x70] sm:$0xff]   ;;  %v608_v28 = vld [vmem:[%s770_s1 + $0x78] sm:$0xff]   ;;  %v15_v31 = vld [vmem:[%s771_s0] sm:$0xff] }
   0xa   :  { %540 = vmatprep.subr.bf16.mxu1 %v590_v10  ;;  %v605_v25 = vld [vmem:[%s770_s1 + $0x30] sm:$0xff]   ;;  %v609_v29 = vld [vmem:[%s770_s1 + $0x38] sm:$0xff]   ;;  %v471_v32 = vcombine.low %v15_v31, %v15_v31  ;;  %v472_v33 = vcombine.high %v15_v31, %v15_v31  ;;  %v16_v36 = vld [vmem:[%s771_s0 + $0x8] sm:$0xff] }
   0xb   :  { %519 = vmatpush3.bf16.msra.mxu0 %v589_v9  ;;  %v606_v26 = vld [vmem:[%s770_s1 + $0xf0] sm:$0xff]   ;;  %v610_v30 = vld [vmem:[%s770_s1 + $0xf8] sm:$0xff]   ;;  %v473_v37 = vcombine.low %v16_v36, %v16_v36  ;;  %v474_v38 = vcombine.high %v16_v36, %v16_v36  ;;  %v617_v39 = vld [vmem:[%s770_s1 + $0x100] sm:$0xff]  }
   0xc   :  { %520 = vmatprep.subr.bf16.mxu0 %v592_v12  ;;  %v607_v27 = vld [vmem:[%s770_s1 + $0xb0] sm:$0xff]   ;;  %v614_v34 = vld [vmem:[%s770_s1 + $0xb8] sm:$0xff]   ;;  %377 = vmatprep.mubr.bf16.mxu0 %v472_v33  ;;  %v618_v40 = vld [vmem:[%s770_s1 + $0x108] sm:$0xff]  }
   0xd   :  { %541 = vmatpush3.bf16.msra.mxu1 %v591_v11  ;;  %417 = vmatprep.mubr.bf16.mxu1 %v474_v38  ;;  %v619_v41 = vld [vmem:[%s770_s1 + $0x110] sm:$0xff]   ;;  %v620_v42 = vld [vmem:[%s770_s1 + $0x118] sm:$0xff]   ;;  %v621_v43 = vld [vmem:[%s770_s1 + $0x120] sm:$0x3f]  }
   0xe   :  { %542 = vmatprep.subr.bf16.mxu1 %v594_v14  ;;  %v343_v44 = vsel %vm341_vm1, %v621_v43, 0  ;;  %v613_v45 = vld [vmem:[%s771_s0 + $0x10] ss:$0 sps:$4 sm:$0xff]   ;;  %v470_v47 = vld [vmem:[%s772_s2] ss:$0 sm:$0xff] }
   0xf   :  { %521 = vmatpush3.bf16.msra.mxu0 %v593_v13 }
  0x10   :  { %522 = vmatprep.subr.bf16.mxu0 %v596_v16 }
  0x11   :  { %543 = vmatpush3.bf16.msra.mxu1 %v595_v15 }
  0x12   :  { %544 = vmatprep.subr.bf16.mxu1 %v598_v18 }
  0x13   :  { %523 = vmatpush3.bf16.msra.mxu0 %v597_v17 }
  0x14   :  { %524 = vmatprep.subr.bf16.mxu0 %v600_v20 }
  0x15   :  { %545 = vmatpush3.bf16.msra.mxu1 %v599_v19 }
  0x16   :  { %546 = vmatprep.subr.bf16.mxu1 %v602_v22 }
  0x17   :  { %525 = vmatpush3.bf16.msra.mxu0 %v601_v21 }
  0x18   :  { %526 = vmatprep.subr.bf16.mxu0 %v604_v24 }
  0x19   :  { %547 = vmatpush3.bf16.msra.mxu1 %v603_v23 }
  0x1a   :  { %548 = vmatprep.subr.bf16.mxu1 %v606_v26 }
  0x1b   :  { %527 = vmatpush3.bf16.msra.mxu0 %v605_v25 }
  0x1c   :  { %528 = vmatprep.subr.bf16.mxu0 %v608_v28 }
  0x1d   :  { %549 = vmatpush3.bf16.msra.mxu1 %v607_v27 }
  0x1e   :  { %550 = vmatprep.subr.bf16.mxu1 %v610_v30 }
  0x1f   :  { %529 = vmatpush3.bf16.msra.mxu0 %v609_v29 }
  0x20   :  { %564 = vmatprep.subr.bf16.mxu0 %v622_v35 }
  0x21   :  { %551 = vmatpush3.bf16.msra.mxu1 %v614_v34 }
  0x22   :  { %378 = vmatmul.mubr.bf16.vlgmr.msra.gmra.mrb[0].mxu0 %v471_v32 }
  0x23   :  { %565 = vmatpush3.bf16.msra.mxu0 %v617_v39  ;;  %574 = vmatprep.mubr.msk.bf16.mxu0 %vm623_vm0, %v622_v35 }
  0x24   :  { %418 = vmatmul.mubr.bf16.vlgmr.msra.gmra.mrb[0].mxu1 %v473_v37  ;;  %566 = vmatprep.subr.bf16.mxu0 %v622_v35 }
  0x27   :  { %567 = vmatpush3.bf16.msra.mxu0 %v618_v40 }
  0x28   :  { %568 = vmatprep.subr.bf16.mxu0 %v622_v35 }
  0x2b   :  { %569 = vmatpush3.bf16.msra.mxu0 %v619_v41 }
  0x2c   :  { %570 = vmatprep.subr.bf16.mxu0 %v622_v35 }
  0x2f   :  { %571 = vmatpush3.bf16.msra.mxu0 %v620_v42 }
  0x30   :  { %572 = vmatprep.subr.bf16.mxu0 %v622_v35 }
  0x33   :  { %573 = vmatpush3.bf16.msra.mxu0 %v343_v44 }
  0x36   :  { %575 = vmatmul.mubr.msk.bf16.vlgmr.msra.gmra.mrb[4].mxu0 %vm337_vm2, %v613_v45 }
  0xf5   :  { %v530_v46 = vpop.f32.mrb[0].mxu0 }
  0xf6   :  { %v531_v48 = vpop.f32.mrb[1].mxu0 }
  0xf7   :  { %v532_v49 = vadd.f32 %v531_v48, %v530_v46  ;;  %v533_v50 = vpop.f32.mrb[2].mxu0  ;;  %v552_v51 = vpop.f32.mrb[0].mxu1 }
  0xf8   :  { %v534_v52 = vpop.f32.mrb[3].mxu0  ;;  %v553_v53 = vpop.f32.mrb[1].mxu1 }
  0xf9   :  { %v380_v54 = vadd.f32 %v532_v49, %v470_v47  ;;  %v554_v55 = vadd.f32 %v553_v53, %v552_v51  ;;  %v555_v56 = vpop.f32.mrb[2].mxu1 }
  0xfa   :  { %v556_v57 = vpop.f32.mrb[3].mxu1 }
  0xfb   :  { %v420_v58 = vadd.f32 %v554_v55, %v380_v54 }
 0x109   :  { %v459_v59 = vpop.f32.mrb[4].mxu0 }
 0x10a   :  { %v460_v60 = vadd.f32 %v459_v59, %v420_v58  ;;  %v576_v61 = vpop.f32.mrb[5].mxu0 }
 0x10b   :  { %v462_v62 = vpop.f32.mrb[6].mxu0 }
 0x10c   :  { %465 = vst [vmem:[%s773_s3] sm:$0xff] %v460_v60  ;;  %v577_v63 = vpop.f32.mrb[7].mxu0 }

</bundles_post_ra>
